<compile_context>
chip_gen: v5e
topology: v5e:2x2
jax: 0.10.0
libtpu: 0.0.40
codegen_flags: <defaults>
</compile_context>

<pallas_src>
import functools

import jax
import jax.numpy as jnp
from jax.experimental import pallas as pl
from jax.experimental.pallas import tpu as pltpu


# Split the batch across (up to) 2 TensorCores; on 1-TC chips the "parallel"
# axis simply runs serially with negligible overhead.
_NUM_CORE_SPLIT = 2


def _smoothness_kernel(x_ref, acc_ref, *, h):
    # x_ref: (TILE_B, W*H) block of flattened images; acc_ref: (8, W*H) f32.
    x = x_ref[...]
    tb, wh = x.shape

    # Neighbour values via non-negative lane rolls; the wrap-around positions
    # (j == H-1 for the first, i == W-1 for the second) are masked out in the
    # wrapper epilogue.
    x_right = pltpu.roll(x, shift=wh - 1, axis=1)  # x[i, j+1] at flat (i, j)
    x_down = pltpu.roll(x, shift=wh - h, axis=1)   # x[i+1, j] at flat (i, j)

    # Single fused per-element term (VPU), accumulated in f32.
    d = (jnp.abs(x - x_down) + jnp.abs(x - x_right)).astype(jnp.float32)

    @pl.when(pl.program_id(1) == 0)
    def _init():
        acc_ref[...] = jnp.zeros_like(acc_ref)

    # Reduce only the leading (groups-of-8-rows) axis: pure VPU vreg adds, no
    # per-step XLU sublane reduce, and the accumulator store stays lane-dense.
    acc_ref[...] += jnp.sum(d.reshape(tb // 8, 8, wh), axis=0)


def _vmem_capacity_bytes():
    try:
        return int(pltpu.get_tpu_info().vmem_capacity_bytes)
    except Exception:
        return 64 * 1024 * 1024  # conservative fallback (v7x per-core VMEM)


@functools.partial(jax.jit, static_argnames=("block_bytes_override",))
def smoothness_loss(pred_label, *, block_bytes_override=None):
    """pred_label: (N, C, W, H). Returns the scalar SmoothnessLoss (float32)."""
    n, c, w, h = pred_label.shape
    b = n * c
    wh = w * h
    x = pred_label.reshape(b, wh)  # free row-major reshape -> lane-dense

    itemsize = x.dtype.itemsize

    # Per-generation block budget / scoped-VMEM limit.
    vmem_cap = _vmem_capacity_bytes()
    if vmem_cap > 96 * 1024 * 1024:          # v5e / v6e class (128 MiB VMEM)
        target_block_bytes = 4 << 20
        vmem_limit = 64 << 20
    else:                                     # v7x class (64 MiB VMEM)
        target_block_bytes = 2 << 20
        vmem_limit = 44 << 20
    if block_bytes_override is not None:
        target_block_bytes = int(block_bytes_override)

    # Padded VMEM footprint of one flattened image (lanes pad to mult. of 128).
    lane_wh = int(pl.cdiv(wh, 128)) * 128
    row_bytes = lane_wh * itemsize
    sub_mult = max(8, 32 // itemsize)         # sublane packing: 8/16/32 rows

    # 2x block (double-buffered input) + ~4 block-sized f32 temporaries must
    # stay well under vmem_limit; a `target_block_bytes` raw block does.
    tile_b = max(sub_mult,
                 (target_block_bytes // row_bytes) // sub_mult * sub_mult)
    per_core_b = int(pl.cdiv(b, _NUM_CORE_SPLIT))
    tile_b = int(min(tile_b, int(pl.cdiv(per_core_b, sub_mult)) * sub_mult))
    tile_b = max(tile_b, sub_mult)
    # TODO(synk): planes too large for a single (sub_mult, W*H) block (e.g.
    # 2048x2048 f32) would need a W-tiled path with a 1-row halo; not needed
    # for this module's small label maps.

    num_blocks = int(pl.cdiv(b, tile_b))
    blocks_per_core = int(max(1, pl.cdiv(num_blocks, _NUM_CORE_SPLIT)))
    b_padded = _NUM_CORE_SPLIT * blocks_per_core * tile_b
    if b_padded != b:
        # Zero padding is exact: |0 - 0| contributes nothing to the sum.
        x = jnp.pad(x, ((0, b_padded - b), (0, 0)))

    acc = pl.pallas_call(
        functools.partial(_smoothness_kernel, h=h),
        out_shape=jax.ShapeDtypeStruct((_NUM_CORE_SPLIT, 8, wh), jnp.float32),
        grid_spec=pltpu.PrefetchScalarGridSpec(
            num_scalar_prefetch=0,
            grid=(_NUM_CORE_SPLIT, blocks_per_core),
            in_specs=[pl.BlockSpec(
                (tile_b, wh),
                lambda cidx, i: (cidx * blocks_per_core + i, 0))],
            out_specs=pl.BlockSpec((None, 8, wh),
                                   lambda cidx, i: (cidx, 0, 0)),
        ),
        compiler_params=pltpu.CompilerParams(
            dimension_semantics=("parallel", "arbitrary"),
            vmem_limit_bytes=vmem_limit,
        ),
    )(x)

    # Tiny epilogue: collapse the per-core / per-sublane-group partial sums,
    # apply the boundary mask (exclude i == w-1 and j == h-1 for BOTH diff
    # directions, matching the PyTorch nested loop), and normalize by w*h.
    acc_img = jnp.sum(acc, axis=(0, 1)).reshape(w, h)
    mask = (jnp.arange(w)[:, None] < w - 1) & (jnp.arange(h)[None, :] < h - 1)
    return jnp.sum(jnp.where(mask, acc_img, 0.0)) / jnp.float32(w * h)


def _reference(pred_label):
    x = pred_label.astype(jnp.float32)
    _, _, w, h = x.shape
    inner = x[:, :, :-1, :-1]
    dw = jnp.abs(inner - x[:, :, 1:, :-1]).sum()
    dh = jnp.abs(inner - x[:, :, :-1, 1:]).sum()
    return (dw + dh) / (w * h)


if __name__ == "__main__":
    key = jax.random.PRNGKey(0)
    x = jax.random.normal(key, (2, 4, 16, 16), dtype=jnp.float32)

    loss = jax.block_until_ready(smoothness_loss(x))
    ref = _reference(x)
    assert jnp.allclose(loss, ref, rtol=2e-5, atol=1e-4), (loss, ref)

    # Also exercise the multi-step accumulator path (2 cores x 2 "arbitrary"
    # steps, tile_b forced down to 8 images per block).
    key2 = jax.random.split(key)[1]
    x2 = jax.random.normal(key2, (4, 8, 16, 16), dtype=jnp.float32)
    loss2 = jax.block_until_ready(smoothness_loss(x2, block_bytes_override=4096))
    ref2 = _reference(x2)
    assert jnp.allclose(loss2, ref2, rtol=2e-5, atol=1e-4), (loss2, ref2)

    print("KERNEL_OK")
</pallas_src>

<mosaic_0001>
module attributes {stable_mosaic.version = 11 : i64} {
  func.func @_smoothness_kernel(%arg0: i32, %arg1: i32, %arg2: memref<8x256xf32, #tpu.memory_space<vmem>>, %arg3: memref<1x8x256xf32, #tpu.memory_space<vmem>>) attributes {dimension_semantics = [#tpu.dimension_semantics<parallel>, #tpu.dimension_semantics<arbitrary>], iteration_bounds = array<i64: 2, 1>, scalar_prefetch = 0 : i64, scratch_operands = 0 : i64, tpu.core_type = #tpu.core_type<tc>, window_params = [{transform_indices = @transform_0, window_bounds = array<i64: 8, 256>}, {transform_indices = @transform_1, window_bounds = array<i64: 1, 8, 256>}]} {
    %c0 = arith.constant 0 : index
    %c0_0 = arith.constant 0 : index
    %0 = vector.load %arg2[%c0, %c0_0] : memref<8x256xf32, #tpu.memory_space<vmem>>, vector<8x256xf32>
    %c255_i32 = arith.constant 255 : i32
    %1 = tpu.dynamic_rotate %0 by %c255_i32 dim 1 : vector<8x256xf32>, i32 -> vector<8x256xf32>
    %c240_i32 = arith.constant 240 : i32
    %2 = tpu.dynamic_rotate %0 by %c240_i32 dim 1 : vector<8x256xf32>, i32 -> vector<8x256xf32>
    %3 = arith.subf %0, %2 : vector<8x256xf32>
    %4 = math.absf %3 : vector<8x256xf32>
    %5 = arith.subf %0, %1 : vector<8x256xf32>
    %6 = math.absf %5 : vector<8x256xf32>
    %7 = arith.addf %4, %6 : vector<8x256xf32>
    %c0_i32 = arith.constant 0 : i32
    %8 = arith.cmpi eq, %arg1, %c0_i32 : i32
    %9 = arith.extui %8 : i1 to i32
    %c0_i32_1 = arith.constant 0 : i32
    %10 = arith.cmpi ne, %9, %c0_i32_1 : i32
    scf.if %10 {
      %cst_8 = arith.constant 0.000000e+00 : f32
      %19 = vector.broadcast %cst_8 : f32 to vector<8x256xf32>
      %c0_9 = arith.constant 0 : index
      %c0_10 = arith.constant 0 : index
      %c0_11 = arith.constant 0 : index
      %20 = vector.load %arg3[%c0_9, %c0_10, %c0_11] : memref<1x8x256xf32, #tpu.memory_space<vmem>>, vector<1x8x256xf32>
      %21 = vector.shape_cast %20 : vector<1x8x256xf32> to vector<8x256xf32>
      %22 = vector.shape_cast %19 : vector<8x256xf32> to vector<1x8x256xf32>
      tpu.vector_store %arg3[%c0_9, %c0_10, %c0_11], %22 {strides = array<i32>} : memref<1x8x256xf32, #tpu.memory_space<vmem>>, vector<1x8x256xf32>,
    } else {
    }
    %c0_2 = arith.constant 0 : index
    %c0_3 = arith.constant 0 : index
    %c0_4 = arith.constant 0 : index
    %11 = vector.load %arg3[%c0_2, %c0_3, %c0_4] : memref<1x8x256xf32, #tpu.memory_space<vmem>>, vector<1x8x256xf32>
    %12 = vector.shape_cast %11 : vector<1x8x256xf32> to vector<8x256xf32>
    %13 = vector.shape_cast %7 : vector<8x256xf32> to vector<1x8x256xf32>
    %cst = arith.constant dense<0.000000e+00> : vector<8x256xf32>
    %14 = vector.multi_reduction <add>, %13, %cst [0] : vector<1x8x256xf32> to vector<8x256xf32>
    %15 = arith.addf %12, %14 : vector<8x256xf32>
    %c0_5 = arith.constant 0 : index
    %c0_6 = arith.constant 0 : index
    %c0_7 = arith.constant 0 : index
    %16 = vector.load %arg3[%c0_5, %c0_6, %c0_7] : memref<1x8x256xf32, #tpu.memory_space<vmem>>, vector<1x8x256xf32>
    %17 = vector.shape_cast %16 : vector<1x8x256xf32> to vector<8x256xf32>
    %18 = vector.shape_cast %15 : vector<8x256xf32> to vector<1x8x256xf32>
    tpu.vector_store %arg3[%c0_5, %c0_6, %c0_7], %18 {strides = array<i32>} : memref<1x8x256xf32, #tpu.memory_space<vmem>>, vector<1x8x256xf32>,
    return
  }
  func.func @transform_0(%arg0: i32, %arg1: i32) -> (i32, i32) {
    %c1_i32 = arith.constant 1 : i32
    %0 = arith.muli %arg0, %c1_i32 : i32
    %1 = arith.addi %0, %arg1 : i32
    %c0_i32 = arith.constant 0 : i32
    %c0_i32_0 = arith.constant 0 : i32
    return %1, %c0_i32 : i32, i32
  }
  func.func @transform_1(%arg0: i32, %arg1: i32) -> (i32, i32, i32) {
    %c0_i32 = arith.constant 0 : i32
    %c0_i32_0 = arith.constant 0 : i32
    %c0_i32_1 = arith.constant 0 : i32
    return %arg0, %c0_i32, %c0_i32_0 : i32, i32, i32
  }
}

</mosaic_0001>

<bundles_post_ra>
// kernel: smoothness_loss.1
= control target key start
LH: loop header
LB: loop body
LE: loop exit
PB: predicated region body
PF: predicated region fallthrough
CT: control target
= control target key end

     0   :  { %s317_s6 = smov 0   ;;  %s319_s7 = smov 0   ;;  %s357_s0 = inlined_call_operand.vmem [shape: f32[16,256], index: 0, kind: input, shape index: {}]   ;;  %s358_s1 = inlined_call_operand.vmem [shape: f32[2,8,256], index: 1, kind: output, shape index: {}]  }
   0x1   :  { %s321_s8 = smov 0  }
   0x2 LB: > { %s23_s9 = sadd.s32 1, %s299_s7  ;;  %p245_p0 = scmp.ge.s32.totalorder %s303_s8, 1  ;;  %s303_s8 = sphi %s321_s8, %s11_s8   ;;  %s299_s7 = sphi %s319_s7, %s360_s7   ;;  %s295_s6 = sphi %s317_s6, %s359_s6  }
   0x3   : > { %p25_p1 = scmp.ge.s32.totalorder %s23_s9, 2  ;;  %p103_p2 = scmp.lt.s32.totalorder %s303_s8, 3 }
   0x5   : > { %s362_s9 = smov (%p25_p1, %s23_s9), 0  ;;  %p104_p3 = pnand %p245_p0, %p103_p2 }
   0x6   : > { %p125_p4 = scmp.lt.s32.totalorder (!%p104_p3), %s295_s6, 1  ;;  %s305_s14 = smov (!%p104_p3), 112  }
   0x7   : > { %107 = sbr.rel (%p104_p3) target bundleno = 148 (0x94), region = 24  ;;  %s306_s15 = smov (!%p104_p3), 127  }
   0xc   : > { %s364_s6 = smov (!%p125_p4, %s295_s6), 1  ;;  %v142_v2 = vlaneseq }
   0xd   : > { %s252_s10 = sshll.u32 %s364_s6, 4 }
   0xe   : > { %s129_s13 = scalar_lea.vmem %s357_s0, %s252_s10  ;;  %v143_v5 = vand.u32 127, %v142_v2  ;;  %s135_s18 = scalar_lea.vmem %s358_s1, %s252_s10 }
   0xf   : > { %v136_v0 = vld [vmem:[%s129_s13] sm:$0xff]  ;;  %v137_v1 = vld [vmem:[%s129_s13 + $0x8] sm:$0xff] }
  0x10   : > { %147 = vrot.lane.b32.xlu1 %v136_v0, %s305_s14  ;;  %138 = vrot.lane.b32.xlu0 %v136_v0, %s306_s15  ;;  %vm151_vm0 = vcmp.lt.s32.totalorder %v143_v5, 112  ;;  %vm144_vm1 = vcmp.lt.s32.totalorder %v143_v5, 127 }
  0x18   : > { %149 = vrot.lane.b32.xlu1 %v137_v1, %s305_s14  ;;  %140 = vrot.lane.b32.xlu0 %v137_v1, %s306_s15 }
  0x82   : > { %v148_v3 = vpop.permute.xlu1 %147  ;;  %v139_v4 = vpop.permute.xlu0 %138 }
  0x8a   : > { %v150_v6 = vpop.permute.xlu1 %149  ;;  %v141_v7 = vpop.permute.xlu0 %140 }
  0x8b   : > { %v152_v8 = vsel %vm151_vm0, %v148_v3, %v150_v6  ;;  %v153_v9 = vsel %vm151_vm0, %v150_v6, %v148_v3  ;;  %v145_v10 = vsel %vm144_vm1, %v139_v4, %v141_v7  ;;  %v146_v11 = vsel %vm144_vm1, %v141_v7, %v139_v4 }
  0x8c   : > { %v154_v12 = vsub.f32 %v136_v0, %v152_v8  ;;  %v155_v13 = vsub.f32 %v137_v1, %v153_v9  ;;  %v158_v14 = vsub.f32 %v136_v0, %v145_v10  ;;  %v159_v15 = vsub.f32 %v137_v1, %v146_v11 }
  0x8e   : > { %v156_v16 = vand.u32 2147483647, %v154_v12  ;;  %v157_v17 = vand.u32 2147483647, %v155_v13  ;;  %v160_v18 = vand.u32 2147483647, %v158_v14 }
  0x8f   : > { %v161_v19 = vand.u32 2147483647, %v159_v15 }
  0x90   : > { %v162_v20 = vadd.f32 %v160_v18, %v156_v16 }
  0x91   : > { %v163_v21 = vadd.f32 %v161_v19, %v157_v17 }
  0x92   : > { %176 = vst [vmem:[%s135_s18] sm:$0xff] %v162_v20 }
  0x93   : > { %177 = vst [vmem:[%s135_s18 + $0x8] sm:$0xff] %v163_v21 }
  0x94 PF: > { %s11_s8 = sadd.s32 1, %s303_s8   ;;  %s359_s6 = smov %s299_s7 }
  0x95   : > { %p8_p5 = scmp.ge.s32.totalorder %s11_s8, 4   ;;  %s360_s7 = smov %s362_s9 }
  0x97   :  { %10 = sbr.rel (!%p8_p5) target bundleno = 2 (0x2), region = 58 }

</bundles_post_ra>
